<compile_context>
chip_gen: v5e
topology: v5e:2x2
jax: 0.10.0
libtpu: 0.0.40
codegen_flags: <defaults>
</compile_context>

<pallas_src>
import functools

import jax
import jax.numpy as jnp
from jax.experimental import pallas as pl
from jax.experimental.pallas import tpu as pltpu


def _round_up(x, m):
    return ((x + m - 1) // m) * m


def fasttext_kernel(tok_ref, emb_ref, w1_ref, b1_ref, w2_ref, b2_ref,
                    w3_ref, b3_ref, out_ref, *, output_dim, seq_len):
    tok = tok_ref[...]                                   # (TB, S) int32
    tb = tok.shape[0]
    vocab = emb_ref.shape[0]

    # --- embedding + mean pool: accumulate token counts over S on (TB, V)
    # tiles (no 3-D one-hot), then one MXU matmul against the table.
    vocab_ids = jax.lax.broadcasted_iota(jnp.int32, (tb, vocab), 1)
    counts = jnp.zeros((tb, vocab), jnp.float32)
    for s in range(seq_len):                             # static unroll (S is small/static)
        counts = counts + (tok[:, s:s + 1] == vocab_ids).astype(jnp.float32)

    pooled = jnp.dot(counts.astype(emb_ref.dtype), emb_ref[...],
                     preferred_element_type=jnp.float32) * (1.0 / seq_len)

    # --- MLP (bf16 matmul operands, f32 accumulation, f32 elementwise).
    h1 = jnp.dot(pooled.astype(w1_ref.dtype), w1_ref[...],
                 preferred_element_type=jnp.float32) + b1_ref[...]
    h1 = jnp.maximum(h1, 0.0)
    h2 = jnp.dot(h1.astype(w2_ref.dtype), w2_ref[...],
                 preferred_element_type=jnp.float32) + b2_ref[...]
    h2 = jnp.maximum(h2, 0.0)
    logits = jnp.dot(h2.astype(w3_ref.dtype), w3_ref[...],
                     preferred_element_type=jnp.float32) + b3_ref[...]

    # --- mask lane-padding columns so they don't perturb the normalizer,
    # then a numerically stable log-softmax over the real output_dim.
    col = jax.lax.broadcasted_iota(jnp.int32, logits.shape, 1)
    logits = jnp.where(col < output_dim, logits, jnp.float32(-1e30))
    m = jnp.max(logits, axis=-1, keepdims=True)
    shifted = logits - m
    lse = jnp.log(jnp.sum(jnp.exp(shifted), axis=-1, keepdims=True))
    out_ref[...] = shifted - lse                         # (TB, O_pad) f32


def fasttext_forward(review, emb, w1, b1, w2, b2, w3, b3, *, block_b=128):
    """review: (seq_len, batch) token ids.  Returns (batch, output_dim) f32 log-probs."""
    tok = review.T.astype(jnp.int32)                     # (B, S)
    batch, seq_len = tok.shape
    output_dim = w3.shape[1]

    # Batch tile: multiple of 8 sublanes, capped at block_b; pad batch up so the
    # grid divides evenly (pad rows use token id 0 and are sliced away below).
    tb = min(block_b, _round_up(batch, 8))
    b_pad = _round_up(batch, tb)
    if b_pad != batch:
        tok = jnp.pad(tok, ((0, b_pad - batch), (0, 0)))

    # Lane-dense output block: pad the (tiny) output dim to a multiple of 128.
    o_pad = _round_up(output_dim, 128)

    cdt = jnp.bfloat16                                   # matmul-operand dtype
    emb_c = emb.astype(cdt)
    w1_c = w1.astype(cdt)
    w2_c = w2.astype(cdt)
    w3_c = jnp.zeros((w3.shape[0], o_pad), cdt).at[:, :output_dim].set(w3.astype(cdt))
    b1_c = b1.reshape(1, -1).astype(jnp.float32)
    b2_c = b2.reshape(1, -1).astype(jnp.float32)
    b3_c = jnp.zeros((1, o_pad), jnp.float32).at[:, :output_dim].set(
        b3.reshape(1, -1).astype(jnp.float32))

    kernel = functools.partial(fasttext_kernel, output_dim=output_dim,
                               seq_len=seq_len)

    def resident(shape):                                 # VMEM-resident across grid steps
        return pl.BlockSpec(shape, lambda i: (0, 0))

    out = pl.pallas_call(
        kernel,
        out_shape=jax.ShapeDtypeStruct((b_pad, o_pad), jnp.float32),
        grid_spec=pltpu.PrefetchScalarGridSpec(
            num_scalar_prefetch=0,
            grid=(b_pad // tb,),
            in_specs=[
                pl.BlockSpec((tb, seq_len), lambda i: (i, 0)),   # tokens: batch-tiled
                resident(emb_c.shape),
                resident(w1_c.shape), resident(b1_c.shape),
                resident(w2_c.shape), resident(b2_c.shape),
                resident(w3_c.shape), resident(b3_c.shape),
            ],
            out_specs=pl.BlockSpec((tb, o_pad), lambda i: (i, 0)),
        ),
        compiler_params=pltpu.CompilerParams(
            dimension_semantics=("parallel",)),
    )(tok, emb_c, w1_c, b1_c, w2_c, b2_c, w3_c, b3_c)

    return out[:batch, :output_dim]


def _reference(review, emb, w1, b1, w2, b2, w3, b3):
    """Pure-JAX f32 reference mirroring the PyTorch forward."""
    x = emb[review]                                      # (S, B, E)
    x = jnp.transpose(x, (1, 0, 2))                      # (B, S, E)
    x = jnp.mean(x, axis=1)                              # (B, E)  (avg_pool2d over seq)
    h1 = jnp.maximum(x @ w1 + b1, 0.0)
    h2 = jnp.maximum(h1 @ w2 + b2, 0.0)
    logits = h2 @ w3 + b3
    return jax.nn.log_softmax(logits, axis=-1)


if __name__ == "__main__":
    vocab_size = 128
    embedding_dim = 32
    output_dim = 8
    pad_idx = 0
    seq_len = 16
    batch = 8

    key = jax.random.PRNGKey(0)
    k_tok, k_emb, k1, k2, k3, kb1, kb2, kb3 = jax.random.split(key, 8)

    # Deterministic synthetic parameters (Linear weights stored as (in, out)).
    emb = jax.random.normal(k_emb, (vocab_size, embedding_dim), jnp.float32) * 0.1
    emb = emb.at[pad_idx].set(0.0)                       # padding_idx row is zero
    w1 = jax.random.normal(k1, (embedding_dim, 256), jnp.float32) * 0.1
    b1 = jax.random.normal(kb1, (1, 256), jnp.float32) * 0.1
    w2 = jax.random.normal(k2, (256, 64), jnp.float32) * 0.1
    b2 = jax.random.normal(kb2, (1, 64), jnp.float32) * 0.1
    w3 = jax.random.normal(k3, (64, output_dim), jnp.float32) * 0.1
    b3 = jax.random.normal(kb3, (1, output_dim), jnp.float32) * 0.1

    # review: (seq_len, batch) token ids, torchtext-style; includes pad tokens.
    review = jax.random.randint(k_tok, (seq_len, batch), 0, vocab_size, jnp.int32)

    out = fasttext_forward(review, emb, w1, b1, w2, b2, w3, b3)
    out = jax.block_until_ready(out)

    ref = _reference(review, emb, w1, b1[0], w2, b2[0], w3, b3[0])
    assert out.shape == (batch, output_dim)
    assert not bool(jnp.any(jnp.isnan(out)))
    # bf16 matmul operands -> loosened tolerance vs. the f32 reference.
    assert bool(jnp.allclose(out, ref, atol=3e-2, rtol=3e-2))

    print("KERNEL_OK")
</pallas_src>

<mosaic_0001>
module attributes {stable_mosaic.version = 11 : i64} {
  func.func @fasttext_kernel(%arg0: i32, %arg1: memref<8x16xi32, #tpu.memory_space<vmem>>, %arg2: memref<128x32xbf16, #tpu.memory_space<vmem>>, %arg3: memref<32x256xbf16, #tpu.memory_space<vmem>>, %arg4: memref<1x256xf32, #tpu.memory_space<vmem>>, %arg5: memref<256x64xbf16, #tpu.memory_space<vmem>>, %arg6: memref<1x64xf32, #tpu.memory_space<vmem>>, %arg7: memref<64x128xbf16, #tpu.memory_space<vmem>>, %arg8: memref<1x128xf32, #tpu.memory_space<vmem>>, %arg9: memref<8x128xf32, #tpu.memory_space<vmem>>) attributes {dimension_semantics = [#tpu.dimension_semantics<parallel>], iteration_bounds = array<i64: 1>, scalar_prefetch = 0 : i64, scratch_operands = 0 : i64, tpu.core_type = #tpu.core_type<tc>, window_params = [{transform_indices = @transform_0, window_bounds = array<i64: 8, 16>}, {pipeline_mode = #tpu.pipeline_mode<synchronous>, transform_indices = @transform_1, window_bounds = array<i64: 128, 32>}, {pipeline_mode = #tpu.pipeline_mode<synchronous>, transform_indices = @transform_2, window_bounds = array<i64: 32, 256>}, {pipeline_mode = #tpu.pipeline_mode<synchronous>, transform_indices = @transform_3, window_bounds = array<i64: 1, 256>}, {pipeline_mode = #tpu.pipeline_mode<synchronous>, transform_indices = @transform_4, window_bounds = array<i64: 256, 64>}, {pipeline_mode = #tpu.pipeline_mode<synchronous>, transform_indices = @transform_5, window_bounds = array<i64: 1, 64>}, {pipeline_mode = #tpu.pipeline_mode<synchronous>, transform_indices = @transform_6, window_bounds = array<i64: 64, 128>}, {pipeline_mode = #tpu.pipeline_mode<synchronous>, transform_indices = @transform_7, window_bounds = array<i64: 1, 128>}, {transform_indices = @transform_8, window_bounds = array<i64: 8, 128>}]} {
    %c0 = arith.constant 0 : index
    %c0_0 = arith.constant 0 : index
    %0 = vector.load %arg1[%c0, %c0_0] : memref<8x16xi32, #tpu.memory_space<vmem>>, vector<8x16xi32>
    %1 = tpu.iota {dimensions = array<i32: 1>} : vector<8x128xi32>
    %cst = arith.constant 0.000000e+00 : f32
    %2 = vector.broadcast %cst : f32 to vector<8x128xf32>
    %3 = vector.extract_strided_slice %0 {offsets = [0, 0], sizes = [8, 1], strides = [1, 1]} : vector<8x16xi32> to vector<8x1xi32>
    %4 = vector.broadcast %3 : vector<8x1xi32> to vector<8x128xi32>
    %5 = arith.cmpi eq, %4, %1 : vector<8x128xi32>
    %6 = arith.extui %5 : vector<8x128xi1> to vector<8x128xi32>
    %7 = arith.sitofp %6 : vector<8x128xi32> to vector<8x128xf32>
    %8 = arith.addf %2, %7 : vector<8x128xf32>
    %9 = vector.extract_strided_slice %0 {offsets = [0, 1], sizes = [8, 1], strides = [1, 1]} : vector<8x16xi32> to vector<8x1xi32>
    %10 = vector.broadcast %9 : vector<8x1xi32> to vector<8x128xi32>
    %11 = arith.cmpi eq, %10, %1 : vector<8x128xi32>
    %12 = arith.extui %11 : vector<8x128xi1> to vector<8x128xi32>
    %13 = arith.sitofp %12 : vector<8x128xi32> to vector<8x128xf32>
    %14 = arith.addf %8, %13 : vector<8x128xf32>
    %15 = vector.extract_strided_slice %0 {offsets = [0, 2], sizes = [8, 1], strides = [1, 1]} : vector<8x16xi32> to vector<8x1xi32>
    %16 = vector.broadcast %15 : vector<8x1xi32> to vector<8x128xi32>
    %17 = arith.cmpi eq, %16, %1 : vector<8x128xi32>
    %18 = arith.extui %17 : vector<8x128xi1> to vector<8x128xi32>
    %19 = arith.sitofp %18 : vector<8x128xi32> to vector<8x128xf32>
    %20 = arith.addf %14, %19 : vector<8x128xf32>
    %21 = vector.extract_strided_slice %0 {offsets = [0, 3], sizes = [8, 1], strides = [1, 1]} : vector<8x16xi32> to vector<8x1xi32>
    %22 = vector.broadcast %21 : vector<8x1xi32> to vector<8x128xi32>
    %23 = arith.cmpi eq, %22, %1 : vector<8x128xi32>
    %24 = arith.extui %23 : vector<8x128xi1> to vector<8x128xi32>
    %25 = arith.sitofp %24 : vector<8x128xi32> to vector<8x128xf32>
    %26 = arith.addf %20, %25 : vector<8x128xf32>
    %27 = vector.extract_strided_slice %0 {offsets = [0, 4], sizes = [8, 1], strides = [1, 1]} : vector<8x16xi32> to vector<8x1xi32>
    %28 = vector.broadcast %27 : vector<8x1xi32> to vector<8x128xi32>
    %29 = arith.cmpi eq, %28, %1 : vector<8x128xi32>
    %30 = arith.extui %29 : vector<8x128xi1> to vector<8x128xi32>
    %31 = arith.sitofp %30 : vector<8x128xi32> to vector<8x128xf32>
    %32 = arith.addf %26, %31 : vector<8x128xf32>
    %33 = vector.extract_strided_slice %0 {offsets = [0, 5], sizes = [8, 1], strides = [1, 1]} : vector<8x16xi32> to vector<8x1xi32>
    %34 = vector.broadcast %33 : vector<8x1xi32> to vector<8x128xi32>
    %35 = arith.cmpi eq, %34, %1 : vector<8x128xi32>
    %36 = arith.extui %35 : vector<8x128xi1> to vector<8x128xi32>
    %37 = arith.sitofp %36 : vector<8x128xi32> to vector<8x128xf32>
    %38 = arith.addf %32, %37 : vector<8x128xf32>
    %39 = vector.extract_strided_slice %0 {offsets = [0, 6], sizes = [8, 1], strides = [1, 1]} : vector<8x16xi32> to vector<8x1xi32>
    %40 = vector.broadcast %39 : vector<8x1xi32> to vector<8x128xi32>
    %41 = arith.cmpi eq, %40, %1 : vector<8x128xi32>
    %42 = arith.extui %41 : vector<8x128xi1> to vector<8x128xi32>
    %43 = arith.sitofp %42 : vector<8x128xi32> to vector<8x128xf32>
    %44 = arith.addf %38, %43 : vector<8x128xf32>
    %45 = vector.extract_strided_slice %0 {offsets = [0, 7], sizes = [8, 1], strides = [1, 1]} : vector<8x16xi32> to vector<8x1xi32>
    %46 = vector.broadcast %45 : vector<8x1xi32> to vector<8x128xi32>
    %47 = arith.cmpi eq, %46, %1 : vector<8x128xi32>
    %48 = arith.extui %47 : vector<8x128xi1> to vector<8x128xi32>
    %49 = arith.sitofp %48 : vector<8x128xi32> to vector<8x128xf32>
    %50 = arith.addf %44, %49 : vector<8x128xf32>
    %51 = vector.extract_strided_slice %0 {offsets = [0, 8], sizes = [8, 1], strides = [1, 1]} : vector<8x16xi32> to vector<8x1xi32>
    %52 = vector.broadcast %51 : vector<8x1xi32> to vector<8x128xi32>
    %53 = arith.cmpi eq, %52, %1 : vector<8x128xi32>
    %54 = arith.extui %53 : vector<8x128xi1> to vector<8x128xi32>
    %55 = arith.sitofp %54 : vector<8x128xi32> to vector<8x128xf32>
    %56 = arith.addf %50, %55 : vector<8x128xf32>
    %57 = vector.extract_strided_slice %0 {offsets = [0, 9], sizes = [8, 1], strides = [1, 1]} : vector<8x16xi32> to vector<8x1xi32>
    %58 = vector.broadcast %57 : vector<8x1xi32> to vector<8x128xi32>
    %59 = arith.cmpi eq, %58, %1 : vector<8x128xi32>
    %60 = arith.extui %59 : vector<8x128xi1> to vector<8x128xi32>
    %61 = arith.sitofp %60 : vector<8x128xi32> to vector<8x128xf32>
    %62 = arith.addf %56, %61 : vector<8x128xf32>
    %63 = vector.extract_strided_slice %0 {offsets = [0, 10], sizes = [8, 1], strides = [1, 1]} : vector<8x16xi32> to vector<8x1xi32>
    %64 = vector.broadcast %63 : vector<8x1xi32> to vector<8x128xi32>
    %65 = arith.cmpi eq, %64, %1 : vector<8x128xi32>
    %66 = arith.extui %65 : vector<8x128xi1> to vector<8x128xi32>
    %67 = arith.sitofp %66 : vector<8x128xi32> to vector<8x128xf32>
    %68 = arith.addf %62, %67 : vector<8x128xf32>
    %69 = vector.extract_strided_slice %0 {offsets = [0, 11], sizes = [8, 1], strides = [1, 1]} : vector<8x16xi32> to vector<8x1xi32>
    %70 = vector.broadcast %69 : vector<8x1xi32> to vector<8x128xi32>
    %71 = arith.cmpi eq, %70, %1 : vector<8x128xi32>
    %72 = arith.extui %71 : vector<8x128xi1> to vector<8x128xi32>
    %73 = arith.sitofp %72 : vector<8x128xi32> to vector<8x128xf32>
    %74 = arith.addf %68, %73 : vector<8x128xf32>
    %75 = vector.extract_strided_slice %0 {offsets = [0, 12], sizes = [8, 1], strides = [1, 1]} : vector<8x16xi32> to vector<8x1xi32>
    %76 = vector.broadcast %75 : vector<8x1xi32> to vector<8x128xi32>
    %77 = arith.cmpi eq, %76, %1 : vector<8x128xi32>
    %78 = arith.extui %77 : vector<8x128xi1> to vector<8x128xi32>
    %79 = arith.sitofp %78 : vector<8x128xi32> to vector<8x128xf32>
    %80 = arith.addf %74, %79 : vector<8x128xf32>
    %81 = vector.extract_strided_slice %0 {offsets = [0, 13], sizes = [8, 1], strides = [1, 1]} : vector<8x16xi32> to vector<8x1xi32>
    %82 = vector.broadcast %81 : vector<8x1xi32> to vector<8x128xi32>
    %83 = arith.cmpi eq, %82, %1 : vector<8x128xi32>
    %84 = arith.extui %83 : vector<8x128xi1> to vector<8x128xi32>
    %85 = arith.sitofp %84 : vector<8x128xi32> to vector<8x128xf32>
    %86 = arith.addf %80, %85 : vector<8x128xf32>
    %87 = vector.extract_strided_slice %0 {offsets = [0, 14], sizes = [8, 1], strides = [1, 1]} : vector<8x16xi32> to vector<8x1xi32>
    %88 = vector.broadcast %87 : vector<8x1xi32> to vector<8x128xi32>
    %89 = arith.cmpi eq, %88, %1 : vector<8x128xi32>
    %90 = arith.extui %89 : vector<8x128xi1> to vector<8x128xi32>
    %91 = arith.sitofp %90 : vector<8x128xi32> to vector<8x128xf32>
    %92 = arith.addf %86, %91 : vector<8x128xf32>
    %93 = vector.extract_strided_slice %0 {offsets = [0, 15], sizes = [8, 1], strides = [1, 1]} : vector<8x16xi32> to vector<8x1xi32>
    %94 = vector.broadcast %93 : vector<8x1xi32> to vector<8x128xi32>
    %95 = arith.cmpi eq, %94, %1 : vector<8x128xi32>
    %96 = arith.extui %95 : vector<8x128xi1> to vector<8x128xi32>
    %97 = arith.sitofp %96 : vector<8x128xi32> to vector<8x128xf32>
    %98 = arith.addf %92, %97 : vector<8x128xf32>
    %99 = arith.truncf %98 : vector<8x128xf32> to vector<8x128xbf16>
    %c0_1 = arith.constant 0 : index
    %c0_2 = arith.constant 0 : index
    %100 = vector.load %arg2[%c0_1, %c0_2] : memref<128x32xbf16, #tpu.memory_space<vmem>>, vector<128x32xbf16>
    %cst_3 = arith.constant dense<0.000000e+00> : vector<8x32xf32>
    %101 = tpu.matmul %99, %100, %cst_3 {dimension_numbers = #tpu.dot_dimension_numbers<[1], [0], [0], [1], [0, 0, 1, 1], [], []>} : vector<8x128xbf16>, vector<128x32xbf16>, vector<8x32xf32> -> vector<8x32xf32>
    %cst_4 = arith.constant 6.250000e-02 : f32
    %102 = vector.broadcast %cst_4 : f32 to vector<8x32xf32>
    %103 = arith.mulf %101, %102 : vector<8x32xf32>
    %104 = arith.truncf %103 : vector<8x32xf32> to vector<8x32xbf16>
    %c0_5 = arith.constant 0 : index
    %c0_6 = arith.constant 0 : index
    %105 = vector.load %arg3[%c0_5, %c0_6] : memref<32x256xbf16, #tpu.memory_space<vmem>>, vector<32x256xbf16>
    %cst_7 = arith.constant dense<0.000000e+00> : vector<8x256xf32>
    %106 = tpu.matmul %104, %105, %cst_7 {dimension_numbers = #tpu.dot_dimension_numbers<[1], [0], [0], [1], [0, 0, 1, 1], [], []>} : vector<8x32xbf16>, vector<32x256xbf16>, vector<8x256xf32> -> vector<8x256xf32>
    %c0_8 = arith.constant 0 : index
    %c0_9 = arith.constant 0 : index
    %107 = vector.load %arg4[%c0_8, %c0_9] : memref<1x256xf32, #tpu.memory_space<vmem>>, vector<1x256xf32>
    %108 = vector.broadcast %107 : vector<1x256xf32> to vector<8x256xf32>
    %109 = arith.addf %106, %108 : vector<8x256xf32>
    %cst_10 = arith.constant 0.000000e+00 : f32
    %110 = vector.broadcast %cst_10 : f32 to vector<8x256xf32>
    %111 = arith.maximumf %109, %110 : vector<8x256xf32>
    %112 = arith.truncf %111 : vector<8x256xf32> to vector<8x256xbf16>
    %c0_11 = arith.constant 0 : index
    %c0_12 = arith.constant 0 : index
    %113 = vector.load %arg5[%c0_11, %c0_12] : memref<256x64xbf16, #tpu.memory_space<vmem>>, vector<256x64xbf16>
    %cst_13 = arith.constant dense<0.000000e+00> : vector<8x64xf32>
    %114 = tpu.matmul %112, %113, %cst_13 {dimension_numbers = #tpu.dot_dimension_numbers<[1], [0], [0], [1], [0, 0, 1, 1], [], []>} : vector<8x256xbf16>, vector<256x64xbf16>, vector<8x64xf32> -> vector<8x64xf32>
    %c0_14 = arith.constant 0 : index
    %c0_15 = arith.constant 0 : index
    %115 = vector.load %arg6[%c0_14, %c0_15] : memref<1x64xf32, #tpu.memory_space<vmem>>, vector<1x64xf32>
    %116 = vector.broadcast %115 : vector<1x64xf32> to vector<8x64xf32>
    %117 = arith.addf %114, %116 : vector<8x64xf32>
    %cst_16 = arith.constant 0.000000e+00 : f32
    %118 = vector.broadcast %cst_16 : f32 to vector<8x64xf32>
    %119 = arith.maximumf %117, %118 : vector<8x64xf32>
    %120 = arith.truncf %119 : vector<8x64xf32> to vector<8x64xbf16>
    %c0_17 = arith.constant 0 : index
    %c0_18 = arith.constant 0 : index
    %121 = vector.load %arg7[%c0_17, %c0_18] : memref<64x128xbf16, #tpu.memory_space<vmem>>, vector<64x128xbf16>
    %cst_19 = arith.constant dense<0.000000e+00> : vector<8x128xf32>
    %122 = tpu.matmul %120, %121, %cst_19 {dimension_numbers = #tpu.dot_dimension_numbers<[1], [0], [0], [1], [0, 0, 1, 1], [], []>} : vector<8x64xbf16>, vector<64x128xbf16>, vector<8x128xf32> -> vector<8x128xf32>
    %c0_20 = arith.constant 0 : index
    %c0_21 = arith.constant 0 : index
    %123 = vector.load %arg8[%c0_20, %c0_21] : memref<1x128xf32, #tpu.memory_space<vmem>>, vector<1x128xf32>
    %124 = vector.broadcast %123 : vector<1x128xf32> to vector<8x128xf32>
    %125 = arith.addf %122, %124 : vector<8x128xf32>
    %126 = tpu.iota {dimensions = array<i32: 1>} : vector<8x128xi32>
    %c8_i32 = arith.constant 8 : i32
    %127 = vector.broadcast %c8_i32 : i32 to vector<8x128xi32>
    %128 = arith.cmpi slt, %126, %127 : vector<8x128xi32>
    %cst_22 = arith.constant -1.000000e+30 : f32
    %129 = vector.broadcast %cst_22 : f32 to vector<8x128xf32>
    %130 = arith.select %128, %125, %129 : vector<8x128xi1>, vector<8x128xf32>
    %cst_23 = arith.constant dense<0xFF800000> : vector<8xf32>
    %131 = vector.multi_reduction <maximumf>, %130, %cst_23 [1] : vector<8x128xf32> to vector<8xf32>
    %132 = vector.shape_cast %131 : vector<8xf32> to vector<8x1xf32>
    %133 = vector.broadcast %132 : vector<8x1xf32> to vector<8x128xf32>
    %134 = arith.subf %130, %133 : vector<8x128xf32>
    %135 = math.exp %134 : vector<8x128xf32>
    %cst_24 = arith.constant dense<0.000000e+00> : vector<8xf32>
    %136 = vector.multi_reduction <add>, %135, %cst_24 [1] : vector<8x128xf32> to vector<8xf32>
    %137 = vector.shape_cast %136 : vector<8xf32> to vector<8x1xf32>
    %138 = math.log %137 : vector<8x1xf32>
    %139 = vector.broadcast %138 : vector<8x1xf32> to vector<8x128xf32>
    %140 = arith.subf %134, %139 : vector<8x128xf32>
    %c0_25 = arith.constant 0 : index
    %c0_26 = arith.constant 0 : index
    %141 = vector.load %arg9[%c0_25, %c0_26] : memref<8x128xf32, #tpu.memory_space<vmem>>, vector<8x128xf32>
    tpu.vector_store %arg9[%c0_25, %c0_26], %140 {strides = array<i32>} : memref<8x128xf32, #tpu.memory_space<vmem>>, vector<8x128xf32>,
    return
  }
  func.func @transform_0(%arg0: i32) -> (i32, i32) {
    %c0_i32 = arith.constant 0 : i32
    %c0_i32_0 = arith.constant 0 : i32
    return %arg0, %c0_i32 : i32, i32
  }
  func.func @transform_1(%arg0: i32) -> (i32, i32) {
    %c0_i32 = arith.constant 0 : i32
    %c0_i32_0 = arith.constant 0 : i32
    %c0_i32_1 = arith.constant 0 : i32
    return %c0_i32, %c0_i32_0 : i32, i32
  }
  func.func @transform_2(%arg0: i32) -> (i32, i32) {
    %c0_i32 = arith.constant 0 : i32
    %c0_i32_0 = arith.constant 0 : i32
    %c0_i32_1 = arith.constant 0 : i32
    return %c0_i32, %c0_i32_0 : i32, i32
  }
  func.func @transform_3(%arg0: i32) -> (i32, i32) {
    %c0_i32 = arith.constant 0 : i32
    %c0_i32_0 = arith.constant 0 : i32
    %c0_i32_1 = arith.constant 0 : i32
    return %c0_i32, %c0_i32_0 : i32, i32
  }
  func.func @transform_4(%arg0: i32) -> (i32, i32) {
    %c0_i32 = arith.constant 0 : i32
    %c0_i32_0 = arith.constant 0 : i32
    %c0_i32_1 = arith.constant 0 : i32
    return %c0_i32, %c0_i32_0 : i32, i32
  }
  func.func @transform_5(%arg0: i32) -> (i32, i32) {
    %c0_i32 = arith.constant 0 : i32
    %c0_i32_0 = arith.constant 0 : i32
    %c0_i32_1 = arith.constant 0 : i32
    return %c0_i32, %c0_i32_0 : i32, i32
  }
  func.func @transform_6(%arg0: i32) -> (i32, i32) {
    %c0_i32 = arith.constant 0 : i32
    %c0_i32_0 = arith.constant 0 : i32
    %c0_i32_1 = arith.constant 0 : i32
    return %c0_i32, %c0_i32_0 : i32, i32
  }
  func.func @transform_7(%arg0: i32) -> (i32, i32) {
    %c0_i32 = arith.constant 0 : i32
    %c0_i32_0 = arith.constant 0 : i32
    %c0_i32_1 = arith.constant 0 : i32
    return %c0_i32, %c0_i32_0 : i32, i32
  }
  func.func @transform_8(%arg0: i32) -> (i32, i32) {
    %c0_i32 = arith.constant 0 : i32
    %c0_i32_0 = arith.constant 0 : i32
    return %arg0, %c0_i32 : i32, i32
  }
}

</mosaic_0001>

<bundles_post_ra>
// kernel: tpu_custom_call.1
= control target key start
LH: loop header
LB: loop body
LE: loop exit
PB: predicated region body
PF: predicated region fallthrough
CT: control target
= control target key end

     0   :  { %v778_v1 = vmov 2   ;;  %v779_v2 = vmov 0   ;;  %s999_s0 = inlined_call_operand.vmem [shape: s32[8,16], index: 0, kind: input, shape index: {}]   ;;  %s1000_s1 = inlined_call_operand.vmem [shape: bf16[128,32], index: 1, kind: input, shape index: {}]   ;;  %s1001_s2 = inlined_call_operand.vmem [shape: bf16[32,256], index: 2, kind: input, shape index: {}]   ;;  %s1002_s3 = inlined_call_operand.vmem [shape: f32[1,256], index: 3, kind: input, shape index: {}]   ;;  %s1003_s4 = inlined_call_operand.vmem [shape: bf16[256,64], index: 4, kind: input, shape index: {}]   ;;  %s1004_s5 = inlined_call_operand.vmem [shape: f32[1,64], index: 5, kind: input, shape index: {}]   ;;  %s1005_s6 = inlined_call_operand.vmem [shape: bf16[64,128], index: 6, kind: input, shape index: {}]   ;;  %s1006_s7 = inlined_call_operand.vmem [shape: f32[1,128], index: 7, kind: input, shape index: {}]   ;;  %s1007_s8 = inlined_call_operand.hbm [shape: f32[8,128], index: 8, kind: output, shape index: {}]  }
   0x1   :  { %v31_v0 = vld [vmem:[%s999_s0] sm:$0xff]  ;;  %731 = vset.pattern.permute.xlu1 %v778_v1  ;;  %729 = vset.pattern.permute.xlu0 %v779_v2 }
   0x2   :  { %49 = vperm.xlu1 %731, %v31_v0   ;;  %35 = vperm.xlu0 %729, %v31_v0  }
   0x3   :  { %13 = vsyncpa [#allocation3], 0  ;;  %v780_v3 = vmov 4   ;;  %v781_v4 = vmov 3   ;;  %v782_v5 = vmov 1   ;;  %v783_v6 = vmov 5  }
   0x4   :  { %733 = vset.pattern.permute.xlu2 %v780_v3  ;;  %v784_v7 = vmov 6   ;;  %v785_v8 = vmov 8   ;;  %v786_v9 = vmov 7   ;;  %v787_v10 = vmov 9   ;;  %v686_v17 = vld [vmem:[%s1000_s1 + $0x38] sm:$0xff]  ;;  %v685_v19 = vld [vmem:[%s1000_s1 + $0x30] sm:$0xff] }
   0x5   :  { %63 = vperm.xlu2 %733, %v31_v0   ;;  %v788_v11 = vmov 13   ;;  %v789_v12 = vmov 10   ;;  %v790_v13 = vmov 11   ;;  %v791_v14 = vmov 15   ;;  %211 = vmatpush.bf16.msra.mxu0 %v686_v17  ;;  %v684_v20 = vld [vmem:[%s1000_s1 + $0x28] sm:$0xff]  ;;  %v683_v24 = vld [vmem:[%s1000_s1 + $0x20] sm:$0xff] }
   0x6   :  { %v792_v15 = vmov 12   ;;  %v793_v16 = vmov 14   ;;  %v32_v21 = vlaneseq  ;;  %v682_v27 = vld [vmem:[%s1000_s1 + $0x18] sm:$0xff]  ;;  %v794_v28 = vmov 0.0   ;;  %v681_v32 = vld [vmem:[%s1000_s1 + $0x10] sm:$0xff]  ;;  %v680_v37 = vld [vmem:[%s1000_s1 + $0x8] sm:$0xff] }
   0x7   :  { %v679_v41 = vld [vmem:[%s1000_s1] sm:$0xff]  ;;  %v590_v50 = vld [vmem:[%s1001_s2 + $0x10] sm:$0xf]  ;;  %v690_v51 = vld [vmem:[%s1001_s2 + $0x14] sm:$0xf0]  ;;  %s523_s9 = sshll.u32 %s1007_s8, 4  ;;  %s524_s9 = int_to_ptr.hbm [resolvable:$true] %s523_s9 }
   0x8   :  { %v856_v26 = vand.u32 127, %v32_v21  ;;  %v689_v52 = vld [vmem:[%s1001_s2 + $0x14] sm:$0xf]  ;;  %v591_v54 = vor.u32 %v690_v51, %v590_v50  ;;  %v592_v55 = vld [vmem:[%s1001_s2 + $0x18] sm:$0xf0] }
   0x9   :  { %212 = vmatpush.bf16.msra.mxu0 %v685_v19  ;;  %v595_v57 = vor.u32 %v689_v52, %v592_v55  ;;  %v688_v19 = vld [vmem:[%s1001_s2 + $0x4] sm:$0xf0] }
   0xa   :  { %732 = vset.pattern.permute.xlu1 %v781_v4  ;;  %730 = vset.pattern.permute.xlu0 %v782_v5 }
   0xb   :  { %56 = vperm.xlu1 %732, %v31_v0   ;;  %42 = vperm.xlu0 %730, %v31_v0  }
   0xc   :  { %266 = vmatpush.bf16.msra.mxu1 %v591_v54  ;;  %279 = vmatpush.bf16.msra.mxu2 %v595_v57 }
   0xd   :  { %734 = vset.pattern.permute.xlu2 %v783_v6  ;;  %213 = vmatpush.bf16.msra.mxu0 %v684_v20  ;;  %v687_v20 = vld [vmem:[%s1001_s2 + $0x4] sm:$0xf] }
   0xe   :  { %70 = vperm.xlu2 %734, %v31_v0  }
  0x11   :  { %214 = vmatpush.bf16.msra.mxu0 %v683_v24  ;;  %v698_v24 = vld [vmem:[%s1003_s4 + $0x38] sm:$0xff] }
  0x12   :  { %422 = vmatpush.bf16.msra.mxu3 %v698_v24 }
  0x13   :  { %735 = vset.pattern.permute.xlu1 %v784_v7  ;;  %737 = vset.pattern.permute.xlu0 %v785_v8 }
  0x14   :  { %77 = vperm.xlu1 %735, %v31_v0   ;;  %91 = vperm.xlu0 %737, %v31_v0  }
  0x15   :  { %215 = vmatpush.bf16.msra.mxu0 %v682_v27  ;;  %v697_v27 = vld [vmem:[%s1003_s4 + $0x30] sm:$0xff] }
  0x16   :  { %736 = vset.pattern.permute.xlu2 %v786_v9  ;;  %423 = vmatpush.bf16.msra.mxu3 %v697_v27 }
  0x17   :  { %84 = vperm.xlu2 %736, %v31_v0  }
  0x19   :  { %216 = vmatpush.bf16.msra.mxu0 %v681_v32  ;;  %v703_v32 = vld [vmem:[%s1003_s4 + $0x60] sm:$0xff] }
  0x1c   :  { %738 = vset.pattern.permute.xlu1 %v787_v10  ;;  %742 = vset.pattern.permute.xlu0 %v788_v11 }
  0x1d   :  { %98 = vperm.xlu1 %738, %v31_v0   ;;  %126 = vperm.xlu0 %742, %v31_v0  }
  0x1e   :  { %217 = vmatpush.bf16.msra.mxu0 %v680_v37 }
  0x1f   :  { %739 = vset.pattern.permute.xlu2 %v789_v12 }
  0x20   :  { %105 = vperm.xlu2 %739, %v31_v0  }
  0x22   :  { %218 = vmatpush.bf16.msra.mxu0 %v679_v41  ;;  %v701_v41 = vld [vmem:[%s1003_s4 + $0x50] sm:$0xff] }
  0x25   :  { %740 = vset.pattern.permute.xlu1 %v790_v13  ;;  %745 = vset.pattern.permute.xlu0 %v791_v14 }
  0x26   :  { %112 = vperm.xlu1 %740, %v31_v0  }
  0x28   :  { %741 = vset.pattern.permute.xlu2 %v792_v15 }
  0x29   :  { %119 = vperm.xlu2 %741, %v31_v0  }
  0x2e   :  { %743 = vset.pattern.permute.xlu1 %v793_v16 }
  0x2f   :  { %133 = vperm.xlu1 %743, %v31_v0  }
  0x31   :  { %744 = vset.pattern.permute.xlu2 %v791_v14 }
  0x32   :  { %140 = vperm.xlu2 %744, %v31_v0  }
  0x5f   :  { %v64_v18 = vpop.permute.xlu2 %63 }
  0x60   :  { %vm65_vm4 = vcmp.eq.s32.totalorder %v64_v18, %v856_v26  ;;  %v582_v18 = vld [vmem:[%s1001_s2] sm:$0xf] }
  0x61   :  { %v536_v42 = vsel %vm65_vm4, 1.0, %v794_v28  ;;  %v583_v21 = vor.u32 %v688_v19, %v582_v18 }
  0x63   :  { %267 = vmatpush.bf16.msra.mxu1 %v583_v21 }
  0x68   :  { %v71_v25 = vpop.permute.xlu2 %70 }
  0x69   :  { %vm72_vm5 = vcmp.eq.s32.totalorder %v71_v25, %v856_v26  ;;  %v706_v25 = vld [vmem:[%s1003_s4 + $0x78] sm:$0xff] }
  0x6a   :  { %v537_v45 = vsel %vm72_vm5, 1.0, %v794_v28  ;;  %435 = vmatpush.bf16.msrb.mxu1 %v706_v25 }
  0x71   :  { %v85_v34 = vpop.permute.xlu2 %84 }
  0x72   :  { %vm86_vm7 = vcmp.eq.s32.totalorder %v85_v34, %v856_v26  ;;  %v702_v34 = vld [vmem:[%s1003_s4 + $0x58] sm:$0xff] }
  0x73   :  { %v539_v56 = vsel %vm86_vm7, 1.0, %v794_v28 }
  0x74   :  { %v50_v22 = vpop.permute.xlu1 %49  ;;  %v36_v23 = vpop.permute.xlu0 %35 }
  0x75   :  { %vm37_vm0 = vcmp.eq.s32.totalorder %v36_v23, %v856_v26  ;;  %vm51_vm1 = vcmp.eq.s32.totalorder %v50_v22, %v856_v26  ;;  %v584_v22 = vld [vmem:[%s1001_s2 + $0x8] sm:$0xf0] }
  0x76   :  { %v532_v29 = vsel %vm37_vm0, 1.0, %v794_v28  ;;  %v534_v36 = vsel %vm51_vm1, 1.0, %v794_v28  ;;  %v587_v23 = vor.u32 %v687_v20, %v584_v22  ;;  %vm256_vm0 = vcmask 261120  }
  0x77   :  { %vm486_vm1 = vcmask 523264  }
  0x78   :  { %280 = vmatpush.bf16.msra.mxu2 %v587_v23 }
  0x7a   :  { %v106_v48 = vpop.permute.xlu2 %105 }
  0x7b   :  { %vm107_vm10 = vcmp.eq.s32.totalorder %v106_v48, %v856_v26 }
  0x7c   :  { %v542_v1 = vsel %vm107_vm10, 1.0, %v794_v28 }
  0x7d   :  { %v57_v30 = vpop.permute.xlu1 %56  ;;  %v43_v31 = vpop.permute.xlu0 %42 }
  0x7e   :  { %vm44_vm2 = vcmp.eq.s32.totalorder %v43_v31, %v856_v26  ;;  %vm58_vm3 = vcmp.eq.s32.totalorder %v57_v30, %v856_v26  ;;  %v704_v30 = vld [vmem:[%s1003_s4 + $0x68] sm:$0xff]  ;;  %v695_v31 = vld [vmem:[%s1003_s4 + $0x20] sm:$0xff] }
  0x7f   :  { %v533_v33 = vsel %vm44_vm2, 1.0, %v794_v28  ;;  %v535_v39 = vsel %vm58_vm3, 1.0, %v794_v28  ;;  %vm503_vm2 = vcmp.lt.s32.totalorder %v856_v26, 8 }
  0x80   :  { %v47_v35 = vadd.f32 %v533_v33, %v532_v29  ;;  %v696_v29 = vld [vmem:[%s1003_s4 + $0x28] sm:$0xff]  ;;  %v694_v33 = vld [vmem:[%s1003_s4 + $0x18] sm:$0xff] }
  0x81   :  { %424 = vmatpush.bf16.msra.mxu3 %v696_v29 }
  0x82   :  { %v54_v38 = vadd.f32 %v534_v36, %v47_v35  ;;  %v693_v35 = vld [vmem:[%s1003_s4 + $0x10] sm:$0xff] }
  0x83   :  { %v120_v63 = vpop.permute.xlu2 %119 }
  0x84   :  { %v61_v40 = vadd.f32 %v535_v39, %v54_v38  ;;  %vm121_vm11 = vcmp.eq.s32.totalorder %v120_v63, %v856_v26 }
  0x85   :  { %v544_v7 = vsel %vm121_vm11, 1.0, %v794_v28  ;;  %425 = vmatpush.bf16.msra.mxu3 %v695_v31 }
  0x86   :  { %v68_v43 = vadd.f32 %v536_v42, %v61_v40  ;;  %v78_v44 = vpop.permute.xlu1 %77  ;;  %v92_v49 = vpop.permute.xlu0 %91  ;;  %v692_v40 = vld [vmem:[%s1003_s4 + $0x8] sm:$0xff]  ;;  %v691_v42 = vld [vmem:[%s1003_s4] sm:$0xff] }
  0x87   :  { %vm79_vm6 = vcmp.eq.s32.totalorder %v78_v44, %v856_v26  ;;  %vm93_vm8 = vcmp.eq.s32.totalorder %v92_v49, %v856_v26  ;;  %v699_v44 = vld [vmem:[%s1003_s4 + $0x40] sm:$0xff] }
  0x88   :  { %v75_v46 = vadd.f32 %v537_v45, %v68_v43  ;;  %v538_v47 = vsel %vm79_vm6, 1.0, %v794_v28  ;;  %v540_v60 = vsel %vm93_vm8, 1.0, %v794_v28  ;;  %v700_v43 = vld [vmem:[%s1003_s4 + $0x48] sm:$0xff]  ;;  %v710_v45 = vld [vmem:[%s1005_s6 + $0x18] sm:$0xff] }
  0x89   :  { %426 = vmatpush.bf16.msra.mxu3 %v694_v33  ;;  %494 = vmatpush.bf16.msrb.mxu2 %v710_v45 }
  0x8a   :  { %v82_v53 = vadd.f32 %v538_v47, %v75_v46  ;;  %v709_v46 = vld [vmem:[%s1005_s6 + $0x10] sm:$0xff]  ;;  %v230_v47 = vld [vmem:[%s1002_s3] sm:$0x3] }
  0x8b   :  { %v232_v48 = vperm.slane %v230_v47, 0  ;;  %v233_v52 = vperm.slane %v230_v47, 1 }
  0x8c   :  { %v89_v58 = vadd.f32 %v539_v56, %v82_v53  ;;  %v141_v8 = vpop.permute.xlu2 %140 }
  0x8d   :  { %vm142_vm14 = vcmp.eq.s32.totalorder %v141_v8, %v856_v26  ;;  %427 = vmatpush.bf16.msra.mxu3 %v693_v35  ;;  %495 = vmatpush.bf16.msrb.mxu2 %v709_v46 }
  0x8e   :  { %v96_v62 = vadd.f32 %v540_v60, %v89_v58  ;;  %v547_v14 = vsel %vm142_vm14, 1.0, %v794_v28  ;;  %v708_v60 = vld [vmem:[%s1005_s6 + $0x8] sm:$0xff] }
  0x8f   :  { %v99_v59 = vpop.permute.xlu1 %98  ;;  %v127_v4 = vpop.permute.xlu0 %126 }
  0x90   :  { %vm100_vm9 = vcmp.eq.s32.totalorder %v99_v59, %v856_v26  ;;  %vm128_vm13 = vcmp.eq.s32.totalorder %v127_v4, %v856_v26 }
  0x91   :  { %v541_v61 = vsel %vm100_vm9, 1.0, %v794_v28  ;;  %v545_v10 = vsel %vm128_vm13, 1.0, %v794_v28  ;;  %428 = vmatpush.bf16.msra.mxu3 %v692_v40  ;;  %496 = vmatpush.bf16.msrb.mxu2 %v708_v60 }
  0x92   :  { %v103_v0 = vadd.f32 %v541_v61, %v96_v62  ;;  %v707_v61 = vld [vmem:[%s1005_s6] sm:$0xff] }
  0x93   :  { %v746_v62 = vld [vmem:[%s1004_s5] ss:$0 sm:$0xff]  ;;  %s795_s5 = smov [#allocation2]  }
  0x94   :  { %v110_v3 = vadd.f32 %v542_v1, %v103_v0  ;;  %s521_s6 = sshll.u32 %s795_s5, 4  ;;  %s522_s6 = int_to_ptr.vmem [resolvable:$true] %s521_s6 }
  0x95   :  { %429 = vmatpush.bf16.msra.mxu3 %v691_v42  ;;  %497 = vmatpush.bf16.msrb.mxu2 %v707_v61 }
  0x98   :  { %v113_v2 = vpop.permute.xlu1 %112 }
  0x99   :  { %vm114_vm12 = vcmp.eq.s32.totalorder %v113_v2, %v856_v26 }
  0x9a   :  { %v543_v5 = vsel %vm114_vm12, 1.0, %v794_v28 }
  0x9b   :  { %v117_v6 = vadd.f32 %v543_v5, %v110_v3 }
  0x9d   :  { %v124_v9 = vadd.f32 %v544_v7, %v117_v6  ;;  %v747_v7 = vld [vmem:[%s1006_s7] ss:$0 sm:$0xff] }
  0x9f   :  { %v131_v12 = vadd.f32 %v545_v10, %v124_v9 }
  0xa1   :  { %v134_v11 = vpop.permute.xlu1 %133 }
  0xa2   :  { %vm135_vm15 = vcmp.eq.s32.totalorder %v134_v11, %v856_v26 }
  0xa3   :  { %v546_v13 = vsel %vm135_vm15, 1.0, %v794_v28  ;;  %v705_v28 = vld [vmem:[%s1003_s4 + $0x70] sm:$0xff] }
  0xa4   :  { %v138_v15 = vadd.f32 %v546_v13, %v131_v12  ;;  %436 = vmatpush.bf16.msrb.mxu1 %v705_v28 }
  0xa6   :  { %v145_v16 = vadd.f32 %v547_v14, %v138_v15 }
  0xa8   :  { %v146_v17 = vpack.c.bf16 %v145_v16, %v145_v16  ;;  %437 = vmatpush.bf16.msrb.mxu1 %v704_v30 }
  0xaa   :  { %219 = vmatmul.bf16.vlgmr.msra.gmra.mxu0 %v146_v17 }
  0xac   :  { %438 = vmatpush.bf16.msrb.mxu1 %v703_v32 }
  0xb0   :  { %439 = vmatpush.bf16.msrb.mxu1 %v702_v34 }
  0xb4   :  { %440 = vmatpush.bf16.msrb.mxu1 %v701_v41 }
  0xb8   :  { %441 = vmatpush.bf16.msrb.mxu1 %v700_v43 }
  0xbc   :  { %442 = vmatpush.bf16.msrb.mxu1 %v699_v44 }
 0x127   :  { %v220_v36 = vpop.f32.mrf.mxu0 }
 0x128   :  { %v224_v37 = vmul.f32 0.0625, %v220_v36 }
 0x12a   :  { %v225_v38 = vpack.c.bf16 %v224_v37, %v224_v37 }
 0x12c   :  { %596 = vmatmul.msk.bf16.vlgmr.msra.gmra.mxu1 %vm256_vm0, %v225_v38  ;;  %597 = vmatmul.msk.bf16.vlgmr.msra.gmra.mxu2 %vm256_vm0, %v225_v38 }
 0x12f   :  { %v222_v39 = vpop.f32.mrf.mxu0 }
 0x1a9   :  { %v269_v49 = vpop.f32.mrf.mxu1 }
 0x1aa   :  { %v270_v50 = vadd.f32 %v269_v49, %v232_v48 }
 0x1ac   :  { %v286_v51 = vmax.f32 %v270_v50, 0.0 }
 0x1ae   :  { %v288_v53 = vpack.c.bf16 %v286_v51, %v286_v51 }
 0x1af   :  { %v282_v54 = vpop.f32.mrf.mxu2 }
 0x1b0   :  { %v283_v55 = vadd.f32 %v282_v54, %v233_v52  ;;  %430 = vmatmul.bf16.vlgmr.msra.gmra.mxu3 %v288_v53 }
 0x1b1   :  { %v271_v56 = vpop.f32.mrf.mxu1 }
 0x1b2   :  { %v287_v57 = vmax.f32 %v283_v55, 0.0 }
 0x1b4   :  { %v289_v58 = vpack.c.bf16 %v287_v57, %v287_v57 }
 0x1b6   :  { %443 = vmatmul.bf16.vlgmr.msrb.gmra.mxu1 %v289_v58 }
 0x1b7   :  { %v284_v59 = vpop.f32.mrf.mxu2 }
 0x233   :  { %v431_v63 = vpop.f32.mrf.mxu3  ;;  %v444_v0 = vpop.f32.mrf.mxu1 }
 0x234   :  { %v432_v1 = vadd.f32 %v746_v62, %v431_v63 }
 0x236   :  { %v445_v2 = vadd.f32 %v444_v0, %v432_v1 }
 0x238   :  { %v448_v3 = vmax.f32 %v445_v2, 0.0 }
 0x23a   :  { %v449_v4 = vpack.c.bf16 %v448_v3, %v448_v3 }
 0x23b   :  { %v433_v5 = vpop.f32.mrf.mxu3  ;;  %v446_v6 = vpop.f32.mrf.mxu1 }
 0x23c   :  { %678 = vmatmul.msk.bf16.vlgmr.msrb.gmra.mxu2 %vm486_vm1, %v449_v4 }
 0x2bf   :  { %v499_v8 = vpop.f32.mrf.mxu2 }
 0x2c0   :  { %v500_v9 = vadd.f32 %v747_v7, %v499_v8 }
 0x2c2   :  { %v504_v10 = vsel %vm503_vm2, %v500_v9, -1e+30 }
 0x2c3   :  { %505 = vmax.xlane.f32.xlu1 %v504_v10 }
 0x2c7   :  { %v501_v11 = vpop.f32.mrf.mxu2 }
 0x336   :  { %v506_v12 = vpop.xlane.xlu1 %505 }
 0x337   :  { %v507_v13 = vsub.f32 %v504_v10, %v506_v12 }
 0x339   :  { %v508_v14 = vmul.f32 1.442695, %v507_v13 }
 0x33b   :  { %748 = vpow2.f32 %v508_v14 }
 0x341   :  { %v749_v15 = vpop.eup %748 }
 0x342   :  { %510 = vadd.xlane.f32.xlu2 %v749_v15 }
 0x3b5   :  { %v511_v16 = vpop.xlane.xlu2 %510 }
 0x3b6   :  { %750 = vlog2.f32 %v511_v16 }
 0x3bc   :  { %v751_v17 = vpop.eup %750 }
 0x3bd   :  { %v513_v26 = vmul.f32 0.6931472, %v751_v17 }
 0x3bf   :  { %v514_v18 = vsub.f32 %v507_v13, %v513_v26 }
 0x3c1   :  { %515 = vst [vmem:[#allocation2] sm:$0xff] %v514_v18 }
 0x3c2   :  { %526 = dma.vmem_to_hbm [thread:$0]  %s522_s6, 128, %s524_s9, [#allocation3]  }
 0x3c3   :  { %776 = dma.done.wait [#allocation3], 128  }
 0x3c4   :  { %777 = vsyncadd [#allocation3], 4294967168 }
 0x3c5   :  { %531 = vsyncpa [#allocation3], 1 }

</bundles_post_ra>
